<compile_context>
chip_gen: v5e
topology: v5e:2x2
jax: 0.10.0
libtpu: 0.0.40
codegen_flags: <defaults>
</compile_context>

<pallas_src>
import functools

import jax
import jax.numpy as jnp
import numpy as np
from jax import lax
from jax.experimental import pallas as pl
from jax.experimental.pallas import tpu as pltpu


def _conv_stats_kernel(*refs, n_taps, dilation, tile_l, l_out, l_eff, pad_left,
                       need_left, need_right, mask_current, stack_taps,
                       compute_dtype):
    """Pass 1: conv tile on the MXU + per-channel sum / sum-of-squares."""
    it = iter(refs)
    w_ref = next(it)
    xl_ref = next(it) if need_left else None
    xc_ref = next(it)
    xr_ref = next(it) if need_right else None
    y_ref, s1_ref, s2_ref = next(it), next(it), next(it)

    j = pl.program_id(2)

    @pl.when(j == 0)
    def _init():           # new (batch, C_out-block) sweep -> reset stats accumulators
        s1_ref[...] = jnp.zeros_like(s1_ref)
        s2_ref[...] = jnp.zeros_like(s2_ref)

    # ---- assemble the input window [xl | xc | xr] in compute dtype -------------
    # Conceptual x index of lane i of xc is j*tile_l + i; halos are 128 lanes on
    # either side.  Lanes that fall outside [0, l_eff) (left zero padding, beyond
    # the end of x, or garbage from partially out-of-bounds edge blocks) are
    # masked to zero, so the conv sees exact zero padding.
    xc = xc_ref[0].astype(compute_dtype)
    if mask_current:
        pos_c = j * tile_l + lax.broadcasted_iota(jnp.int32, (1, tile_l), 1)
        xc = jnp.where(pos_c < l_eff, xc, jnp.zeros_like(xc))

    pieces = []
    if need_left:
        xl = xl_ref[0].astype(compute_dtype)
        pos_l = (j * tile_l - 128) + lax.broadcasted_iota(jnp.int32, (1, 128), 1)
        pieces.append(jnp.where(pos_l >= 0, xl, jnp.zeros_like(xl)))
    pieces.append(xc)
    if need_right:
        xr = xr_ref[0].astype(compute_dtype)
        pos_r = (j + 1) * tile_l + lax.broadcasted_iota(jnp.int32, (1, 128), 1)
        pieces.append(jnp.where(pos_r < l_eff, xr, jnp.zeros_like(xr)))
    big = pieces[0] if len(pieces) == 1 else jnp.concatenate(pieces, axis=1)
    width = big.shape[1]
    base = 128 if need_left else 0

    def window(k):         # tap-k window: aligned lane concat + one XLU lane rotate
        off = base - pad_left + k * dilation
        if off == 0:
            return big[:, :tile_l]
        return pltpu.roll(big, shift=width - off, axis=1)[:, :tile_l]

    # ---- convolution on the MXU (f32 accumulation) ------------------------------
    if stack_taps:
        # Stack the K tap windows along the contraction axis -> ONE matmul with a
        # K*C_in-deep contraction (much better MXU fill for small C_in).
        stacked = (window(0) if n_taps == 1 else
                   jnp.concatenate([window(k) for k in range(n_taps)], axis=0))
        y = jnp.dot(w_ref[...], stacked, preferred_element_type=jnp.float32)
    else:
        y = None
        for k in range(n_taps):                          # static unroll, K is small
            part = jnp.dot(w_ref[k], window(k),
                           preferred_element_type=jnp.float32)
            y = part if y is None else y + part

    # ---- partial BN statistics (mask only on the ragged last tile) --------------
    rem = l_out % tile_l
    if rem == 0:
        s1_ref[0] += jnp.sum(y, axis=1, keepdims=True)
        s2_ref[0] += jnp.sum(y * y, axis=1, keepdims=True)
    else:
        last = pl.num_programs(2) - 1

        @pl.when(j < last)
        def _full():
            s1_ref[0] += jnp.sum(y, axis=1, keepdims=True)
            s2_ref[0] += jnp.sum(y * y, axis=1, keepdims=True)

        @pl.when(j == last)
        def _masked():
            col = lax.broadcasted_iota(jnp.int32, (1, tile_l), 1)
            valid = (col < rem).astype(jnp.float32)
            yv = y * valid
            s1_ref[0] += jnp.sum(yv, axis=1, keepdims=True)
            s2_ref[0] += jnp.sum(yv * y, axis=1, keepdims=True)

    y_ref[0] = y.astype(y_ref.dtype)


def _bn_relu_kernel(y_ref, scale_ref, shift_ref, o_ref, *, is_activation):
    """Pass 2: y*scale + shift (+ ReLU), written directly in NCL layout."""
    out = y_ref[0].astype(jnp.float32) * scale_ref[...] + shift_ref[...]
    if is_activation:
        out = jnp.maximum(out, 0.0)
    o_ref[0] = out.astype(o_ref.dtype)


def conv_br_1d(x, weight, gamma, beta, *, padding=0, dilation=1, stride=1,
               groups=1, is_activation=True, eps=1e-5,
               compute_dtype=jnp.bfloat16, out_dtype=jnp.float32,
               tile_l=None, stack_taps=None):
    """ConvBR1d forward.  x: (B, C_in, L).  weight: (C_out, C_in, K)."""
    assert groups == 1   # TODO(synk): grouped conv not implemented (module default groups=1)
    assert stride == 1   # TODO(synk): stride > 1 not implemented in the fused-tap kernel
    B, C_in, L = x.shape
    C_out, c_in_w, K = weight.shape
    assert c_in_w == C_in

    reach = dilation * (K - 1)
    L_out = L + 2 * padding - reach
    assert L_out > 0
    # Halos are fixed 128-lane blocks -> the conv reach must fit inside one halo.
    assert reach <= 128, "dilation*(K-1) must be <= 128"  # TODO(synk): larger reach

    if stack_taps is None:
        # Stack taps along the contraction axis when C_in underfills the MXU.
        stack_taps = (K > 1) and (C_in < 256)

    # C_out tiling: second "parallel" grid axis (v7x megacore) for wide convs.
    if C_out >= 512 and C_out % 256 == 0:
        c_out_tile = 256
    else:
        c_out_tile = C_out
    n_co = C_out // c_out_tile

    # L tile: lane-dense multiple of 128, as large as a conservative VMEM budget
    # allows (per-grid-step overhead ~0.35us; bigger tiles -> better HBM use).
    cbytes = jnp.dtype(compute_dtype).itemsize
    xbytes = max(jnp.dtype(x.dtype).itemsize, cbytes)

    def pass1_vmem(t):
        per_buf = (C_in * (t + 256) * xbytes            # x tile + halos
                   + c_out_tile * t * cbytes            # y tile
                   + K * C_in * c_out_tile * cbytes     # weights
                   + 2 * c_out_tile * 4)                # stats
        temps = (C_in * (t + 256) * cbytes              # concatenated window
                 + K * C_in * t * cbytes                # stacked / rolled windows
                 + c_out_tile * t * 4)                  # f32 accumulator
        return 2 * per_buf + temps                      # double-buffered blocks

    if tile_l is None:
        cap = 1024
        while cap > 128 and pass1_vmem(cap) > 20 * 1024 * 1024:
            cap //= 2
        tile_l = min(cap, 128 * pl.cdiv(L_out, 128))
    assert tile_l % 128 == 0
    nt = pl.cdiv(L_out, tile_l)

    # Fast path: read x straight from HBM (no padded/cast copy); the kernel masks
    # the left zero padding and the ragged right edge itself.
    fast = (padding <= 128) and ((nt - 1) * tile_l < L)
    if fast:
        x_in, l_eff, pad_left = x, L, padding
    else:
        # Rare configs (very large padding vs. reach): materialize the zero-padded
        # input once and run the same kernel with pad_left=0.
        x_in = jnp.pad(x, ((0, 0), (0, 0), (padding, padding))).astype(compute_dtype)
        l_eff, pad_left = L + 2 * padding, 0

    need_left = pad_left > 0
    need_right = reach > pad_left
    mask_current = nt * tile_l > l_eff
    T128 = tile_l // 128
    n128 = pl.cdiv(l_eff, 128)

    # Weights: (C_out, K*C_in) when taps are stacked, else (K, C_out, C_in).
    if stack_taps:
        w_arg = jnp.transpose(weight, (0, 2, 1)).reshape(C_out, K * C_in)
        w_arg = w_arg.astype(compute_dtype)
        w_spec = pl.BlockSpec((c_out_tile, K * C_in), lambda b, co, j: (co, 0))
    else:
        w_arg = jnp.transpose(weight, (2, 0, 1)).astype(compute_dtype)
        w_spec = pl.BlockSpec((K, c_out_tile, C_in), lambda b, co, j: (0, co, 0))

    in_specs = [w_spec]
    args = [w_arg]
    if need_left:      # 128-lane left halo (clamped; zeroed in-kernel when j == 0)
        in_specs.append(pl.BlockSpec(
            (1, C_in, 128),
            lambda b, co, j: (b, 0, jnp.maximum(j * T128 - 1, 0))))
        args.append(x_in)
    in_specs.append(pl.BlockSpec((1, C_in, tile_l), lambda b, co, j: (b, 0, j)))
    args.append(x_in)
    if need_right:     # 128-lane right halo (clamped; masked in-kernel past l_eff)
        in_specs.append(pl.BlockSpec(
            (1, C_in, 128),
            lambda b, co, j: (b, 0, jnp.minimum((j + 1) * T128, n128 - 1))))
        args.append(x_in)

    kernel1 = functools.partial(
        _conv_stats_kernel, n_taps=K, dilation=dilation, tile_l=tile_l,
        l_out=L_out, l_eff=l_eff, pad_left=pad_left, need_left=need_left,
        need_right=need_right, mask_current=mask_current, stack_taps=stack_taps,
        compute_dtype=compute_dtype)

    # ---- pass 1: conv tiles + per-(batch, channel) sum / sum-of-squares ---------
    y, s1, s2 = pl.pallas_call(
        kernel1,
        grid=(B, n_co, nt),
        in_specs=in_specs,
        out_specs=[
            pl.BlockSpec((1, c_out_tile, tile_l), lambda b, co, j: (b, co, j)),
            pl.BlockSpec((1, c_out_tile, 1), lambda b, co, j: (b, co, 0)),
            pl.BlockSpec((1, c_out_tile, 1), lambda b, co, j: (b, co, 0)),
        ],
        out_shape=[
            jax.ShapeDtypeStruct((B, C_out, nt * tile_l), compute_dtype),
            jax.ShapeDtypeStruct((B, C_out, 1), jnp.float32),
            jax.ShapeDtypeStruct((B, C_out, 1), jnp.float32),
        ],
        compiler_params=pltpu.CompilerParams(
            dimension_semantics=("parallel", "parallel", "arbitrary"),
            vmem_limit_bytes=32 * 1024 * 1024),
    )(*args)

    # ---- tiny glue: fold training-mode BN stats + gamma/beta into scale/shift ---
    count = float(B * L_out)
    g = gamma.astype(jnp.float32)
    mean = jnp.sum(s1[..., 0], axis=0) / count                 # (C_out,)
    ex2 = jnp.sum(s2[..., 0], axis=0) / count
    var = jnp.maximum(ex2 - mean * mean, 0.0)                  # biased variance
    # TODO(synk): E[y^2]-mean^2 loses precision when |mean| >> std; a shifted /
    #             Welford-style accumulation would be more robust.
    rstd = lax.rsqrt(var + eps)
    scale = (g * rstd).reshape(C_out, 1)
    shift = (beta.astype(jnp.float32) - mean * g * rstd).reshape(C_out, 1)

    # ---- pass 2: normalize + affine + ReLU, output written directly in NCL ------
    kernel2 = functools.partial(_bn_relu_kernel, is_activation=is_activation)
    out = pl.pallas_call(
        kernel2,
        grid=(B, nt),
        in_specs=[
            pl.BlockSpec((1, C_out, tile_l), lambda b, j: (b, 0, j)),
            pl.BlockSpec((C_out, 1), lambda b, j: (0, 0)),   # tiny resident consts
            pl.BlockSpec((C_out, 1), lambda b, j: (0, 0)),
        ],
        out_specs=pl.BlockSpec((1, C_out, tile_l), lambda b, j: (b, 0, j)),
        out_shape=jax.ShapeDtypeStruct((B, C_out, L_out), out_dtype),
        compiler_params=pltpu.CompilerParams(
            dimension_semantics=("parallel", "parallel"),
            vmem_limit_bytes=32 * 1024 * 1024),
    )(y, scale, shift)
    return out


def _reference(x, weight, gamma, beta, *, padding, dilation, stride,
               is_activation, eps=1e-5):
    y = lax.conv_general_dilated(
        x, weight, window_strides=(stride,), padding=[(padding, padding)],
        rhs_dilation=(dilation,), dimension_numbers=("NCH", "OIH", "NCH"))
    mean = jnp.mean(y, axis=(0, 2), keepdims=True)
    var = jnp.mean((y - mean) ** 2, axis=(0, 2), keepdims=True)
    y = (y - mean) / jnp.sqrt(var + eps)
    y = gamma[None, :, None] * y + beta[None, :, None]
    if is_activation:
        y = jnp.maximum(y, 0.0)
    return y


if __name__ == "__main__":
    # Small shapes consistent with ConvBR1d: x is (B, C_in, L).
    B, C_in, C_out, L = 2, 4, 8, 16
    ksize, padding, dilation = 3, 1, 1

    key = jax.random.PRNGKey(0)
    kx, kw = jax.random.split(key)
    x = jax.random.normal(kx, (B, C_in, L), dtype=jnp.float32)

    # Deterministic PyTorch-style init: kaiming_uniform(a=sqrt(5)) -> U(-1/sqrt(fan_in), ..)
    fan_in = C_in * ksize
    bound = 1.0 / np.sqrt(fan_in)
    weight = jax.random.uniform(kw, (C_out, C_in, ksize), dtype=jnp.float32,
                                minval=-bound, maxval=bound)
    gamma = jnp.ones((C_out,), dtype=jnp.float32)   # BatchNorm weight
    beta = jnp.zeros((C_out,), dtype=jnp.float32)   # BatchNorm bias

    ref = _reference(x, weight, gamma, beta, padding=padding, dilation=dilation,
                     stride=1, is_activation=True)

    # Exact-precision path (f32 MXU operands, stacked taps, in-kernel padding).
    out_f32 = conv_br_1d(x, weight, gamma, beta, padding=padding,
                         dilation=dilation, compute_dtype=jnp.float32)
    out_f32 = jax.block_until_ready(out_f32)
    np.testing.assert_allclose(np.asarray(out_f32), np.asarray(ref),
                               rtol=1e-5, atol=1e-5)

    # Default optimized path (bf16 MXU operands, f32 accumulation / statistics).
    out_bf16 = conv_br_1d(x, weight, gamma, beta, padding=padding,
                          dilation=dilation)
    out_bf16 = jax.block_until_ready(out_bf16)
    np.testing.assert_allclose(np.asarray(out_bf16), np.asarray(ref),
                               rtol=3e-2, atol=3e-2)

    # No-left-halo / dilated / per-tap-matmul branch (padding=0, dilation=2).
    ref2 = _reference(x, weight, gamma, beta, padding=0, dilation=2,
                      stride=1, is_activation=True)
    out2 = conv_br_1d(x, weight, gamma, beta, padding=0, dilation=2,
                      compute_dtype=jnp.float32, stack_taps=False)
    out2 = jax.block_until_ready(out2)
    np.testing.assert_allclose(np.asarray(out2), np.asarray(ref2),
                               rtol=1e-5, atol=1e-5)

    print("KERNEL_OK")
</pallas_src>

<mosaic_0001>
module attributes {stable_mosaic.version = 11 : i64} {
  func.func @_conv_stats_kernel(%arg0: i32, %arg1: i32, %arg2: i32, %arg3: memref<8x12xf32, #tpu.memory_space<vmem>>, %arg4: memref<1x4x128xf32, #tpu.memory_space<vmem>>, %arg5: memref<1x4x128xf32, #tpu.memory_space<vmem>>, %arg6: memref<1x4x128xf32, #tpu.memory_space<vmem>>, %arg7: memref<1x8x128xf32, #tpu.memory_space<vmem>>, %arg8: memref<1x8x1xf32, #tpu.memory_space<vmem>>, %arg9: memref<1x8x1xf32, #tpu.memory_space<vmem>>) attributes {dimension_semantics = [#tpu.dimension_semantics<parallel>, #tpu.dimension_semantics<parallel>, #tpu.dimension_semantics<arbitrary>], iteration_bounds = array<i64: 2, 1, 1>, scalar_prefetch = 0 : i64, scratch_operands = 0 : i64, tpu.core_type = #tpu.core_type<tc>, window_params = [{transform_indices = @transform_0, window_bounds = array<i64: 8, 12>}, {transform_indices = @transform_1, window_bounds = array<i64: 1, 4, 128>}, {transform_indices = @transform_2, window_bounds = array<i64: 1, 4, 128>}, {transform_indices = @transform_3, window_bounds = array<i64: 1, 4, 128>}, {transform_indices = @transform_4, window_bounds = array<i64: 1, 8, 128>}, {transform_indices = @transform_5, window_bounds = array<i64: 1, 8, 1>}, {transform_indices = @transform_6, window_bounds = array<i64: 1, 8, 1>}]} {
    %c0_i32 = arith.constant 0 : i32
    %0 = arith.cmpi eq, %arg2, %c0_i32 : i32
    %1 = arith.extui %0 : i1 to i32
    %c0_i32_0 = arith.constant 0 : i32
    %2 = arith.cmpi ne, %1, %c0_i32_0 : i32
    scf.if %2 {
      %cst_26 = arith.constant 0.000000e+00 : f32
      %60 = vector.broadcast %cst_26 : f32 to vector<1x8x1xf32>
      %c0_27 = arith.constant 0 : index
      %c0_28 = arith.constant 0 : index
      %c0_29 = arith.constant 0 : index
      %61 = vector.load %arg8[%c0_27, %c0_28, %c0_29] : memref<1x8x1xf32, #tpu.memory_space<vmem>>, vector<1x8x1xf32>
      tpu.vector_store %arg8[%c0_27, %c0_28, %c0_29], %60 {strides = array<i32>} : memref<1x8x1xf32, #tpu.memory_space<vmem>>, vector<1x8x1xf32>,
      %cst_30 = arith.constant 0.000000e+00 : f32
      %62 = vector.broadcast %cst_30 : f32 to vector<1x8x1xf32>
      %c0_31 = arith.constant 0 : index
      %c0_32 = arith.constant 0 : index
      %c0_33 = arith.constant 0 : index
      %63 = vector.load %arg9[%c0_31, %c0_32, %c0_33] : memref<1x8x1xf32, #tpu.memory_space<vmem>>, vector<1x8x1xf32>
      tpu.vector_store %arg9[%c0_31, %c0_32, %c0_33], %62 {strides = array<i32>} : memref<1x8x1xf32, #tpu.memory_space<vmem>>, vector<1x8x1xf32>,
    } else {
    }
    %c0 = arith.constant 0 : index
    %c0_1 = arith.constant 0 : index
    %c0_2 = arith.constant 0 : index
    %3 = vector.load %arg5[%c0, %c0_1, %c0_2] : memref<1x4x128xf32, #tpu.memory_space<vmem>>, vector<1x4x128xf32>
    %4 = vector.shape_cast %3 : vector<1x4x128xf32> to vector<4x128xf32>
    %c128_i32 = arith.constant 128 : i32
    %5 = arith.muli %arg2, %c128_i32 : i32
    %6 = tpu.iota {dimensions = array<i32: 1>} : vector<1x128xi32>
    %7 = vector.broadcast %5 : i32 to vector<1x128xi32>
    %8 = arith.addi %7, %6 : vector<1x128xi32>
    %c16_i32 = arith.constant 16 : i32
    %9 = vector.broadcast %c16_i32 : i32 to vector<1x128xi32>
    %10 = arith.cmpi slt, %8, %9 : vector<1x128xi32>
    %cst = arith.constant 0.000000e+00 : f32
    %11 = vector.broadcast %cst : f32 to vector<4x128xf32>
    %12 = vector.shape_cast %10 : vector<1x128xi1> to vector<1x128xi1>
    %13 = vector.broadcast %12 : vector<1x128xi1> to vector<4x128xi1>
    %14 = arith.select %13, %4, %11 : vector<4x128xi1>, vector<4x128xf32>
    %c0_3 = arith.constant 0 : index
    %c0_4 = arith.constant 0 : index
    %c0_5 = arith.constant 0 : index
    %15 = vector.load %arg4[%c0_3, %c0_4, %c0_5] : memref<1x4x128xf32, #tpu.memory_space<vmem>>, vector<1x4x128xf32>
    %16 = vector.shape_cast %15 : vector<1x4x128xf32> to vector<4x128xf32>
    %c128_i32_6 = arith.constant 128 : i32
    %17 = arith.muli %arg2, %c128_i32_6 : i32
    %c128_i32_7 = arith.constant 128 : i32
    %18 = arith.subi %17, %c128_i32_7 : i32
    %19 = tpu.iota {dimensions = array<i32: 1>} : vector<1x128xi32>
    %20 = vector.broadcast %18 : i32 to vector<1x128xi32>
    %21 = arith.addi %20, %19 : vector<1x128xi32>
    %c0_i32_8 = arith.constant 0 : i32
    %22 = vector.broadcast %c0_i32_8 : i32 to vector<1x128xi32>
    %23 = arith.cmpi sge, %21, %22 : vector<1x128xi32>
    %cst_9 = arith.constant 0.000000e+00 : f32
    %24 = vector.broadcast %cst_9 : f32 to vector<4x128xf32>
    %25 = vector.shape_cast %23 : vector<1x128xi1> to vector<1x128xi1>
    %26 = vector.broadcast %25 : vector<1x128xi1> to vector<4x128xi1>
    %27 = arith.select %26, %16, %24 : vector<4x128xi1>, vector<4x128xf32>
    %c0_10 = arith.constant 0 : index
    %c0_11 = arith.constant 0 : index
    %c0_12 = arith.constant 0 : index
    %28 = vector.load %arg6[%c0_10, %c0_11, %c0_12] : memref<1x4x128xf32, #tpu.memory_space<vmem>>, vector<1x4x128xf32>
    %29 = vector.shape_cast %28 : vector<1x4x128xf32> to vector<4x128xf32>
    %c1_i32 = arith.constant 1 : i32
    %30 = arith.addi %arg2, %c1_i32 : i32
    %c128_i32_13 = arith.constant 128 : i32
    %31 = arith.muli %30, %c128_i32_13 : i32
    %32 = tpu.iota {dimensions = array<i32: 1>} : vector<1x128xi32>
    %33 = vector.broadcast %31 : i32 to vector<1x128xi32>
    %34 = arith.addi %33, %32 : vector<1x128xi32>
    %c16_i32_14 = arith.constant 16 : i32
    %35 = vector.broadcast %c16_i32_14 : i32 to vector<1x128xi32>
    %36 = arith.cmpi slt, %34, %35 : vector<1x128xi32>
    %cst_15 = arith.constant 0.000000e+00 : f32
    %37 = vector.broadcast %cst_15 : f32 to vector<4x128xf32>
    %38 = vector.shape_cast %36 : vector<1x128xi1> to vector<1x128xi1>
    %39 = vector.broadcast %38 : vector<1x128xi1> to vector<4x128xi1>
    %40 = arith.select %39, %29, %37 : vector<4x128xi1>, vector<4x128xf32>
    %41 = tpu.concatenate %27, %14, %40 in 1 : vector<4x128xf32>, vector<4x128xf32>, vector<4x128xf32> -> vector<4x384xf32>
    %c257_i32 = arith.constant 257 : i32
    %42 = tpu.dynamic_rotate %41 by %c257_i32 dim 1 : vector<4x384xf32>, i32 -> vector<4x384xf32>
    %43 = vector.extract_strided_slice %42 {offsets = [0, 0], sizes = [4, 128], strides = [1, 1]} : vector<4x384xf32> to vector<4x128xf32>
    %c256_i32 = arith.constant 256 : i32
    %44 = tpu.dynamic_rotate %41 by %c256_i32 dim 1 : vector<4x384xf32>, i32 -> vector<4x384xf32>
    %45 = vector.extract_strided_slice %44 {offsets = [0, 0], sizes = [4, 128], strides = [1, 1]} : vector<4x384xf32> to vector<4x128xf32>
    %c255_i32 = arith.constant 255 : i32
    %46 = tpu.dynamic_rotate %41 by %c255_i32 dim 1 : vector<4x384xf32>, i32 -> vector<4x384xf32>
    %47 = vector.extract_strided_slice %46 {offsets = [0, 0], sizes = [4, 128], strides = [1, 1]} : vector<4x384xf32> to vector<4x128xf32>
    %48 = tpu.concatenate %43, %45, %47 in 0 : vector<4x128xf32>, vector<4x128xf32>, vector<4x128xf32> -> vector<12x128xf32>
    %c0_16 = arith.constant 0 : index
    %c0_17 = arith.constant 0 : index
    %49 = vector.load %arg3[%c0_16, %c0_17] : memref<8x12xf32, #tpu.memory_space<vmem>>, vector<8x12xf32>
    %cst_18 = arith.constant dense<0.000000e+00> : vector<8x128xf32>
    %50 = tpu.matmul %49, %48, %cst_18 {dimension_numbers = #tpu.dot_dimension_numbers<[1], [0], [0], [1], [0, 0, 1, 1], [], []>} : vector<8x12xf32>, vector<12x128xf32>, vector<8x128xf32> -> vector<8x128xf32>
    %c0_i32_19 = arith.constant 0 : i32
    %51 = arith.cmpi slt, %arg2, %c0_i32_19 : i32
    %52 = arith.extui %51 : i1 to i32
    %c0_i32_20 = arith.constant 0 : i32
    %53 = arith.cmpi ne, %52, %c0_i32_20 : i32
    scf.if %53 {
      %c0_26 = arith.constant 0 : index
      %c0_27 = arith.constant 0 : index
      %c0_28 = arith.constant 0 : index
      %60 = vector.load %arg8[%c0_26, %c0_27, %c0_28] : memref<1x8x1xf32, #tpu.memory_space<vmem>>, vector<1x8x1xf32>
      %61 = vector.shape_cast %60 : vector<1x8x1xf32> to vector<8x1xf32>
      %cst_29 = arith.constant dense<0.000000e+00> : vector<8xf32>
      %62 = vector.multi_reduction <add>, %50, %cst_29 [1] : vector<8x128xf32> to vector<8xf32>
      %63 = vector.shape_cast %62 : vector<8xf32> to vector<8x1xf32>
      %64 = arith.addf %61, %63 : vector<8x1xf32>
      %c0_30 = arith.constant 0 : index
      %c0_31 = arith.constant 0 : index
      %c0_32 = arith.constant 0 : index
      %65 = vector.load %arg8[%c0_30, %c0_31, %c0_32] : memref<1x8x1xf32, #tpu.memory_space<vmem>>, vector<1x8x1xf32>
      %66 = vector.shape_cast %65 : vector<1x8x1xf32> to vector<8x1xf32>
      %67 = vector.shape_cast %64 : vector<8x1xf32> to vector<1x8x1xf32>
      tpu.vector_store %arg8[%c0_30, %c0_31, %c0_32], %67 {strides = array<i32>} : memref<1x8x1xf32, #tpu.memory_space<vmem>>, vector<1x8x1xf32>,
      %c0_33 = arith.constant 0 : index
      %c0_34 = arith.constant 0 : index
      %c0_35 = arith.constant 0 : index
      %68 = vector.load %arg9[%c0_33, %c0_34, %c0_35] : memref<1x8x1xf32, #tpu.memory_space<vmem>>, vector<1x8x1xf32>
      %69 = vector.shape_cast %68 : vector<1x8x1xf32> to vector<8x1xf32>
      %70 = arith.mulf %50, %50 : vector<8x128xf32>
      %cst_36 = arith.constant dense<0.000000e+00> : vector<8xf32>
      %71 = vector.multi_reduction <add>, %70, %cst_36 [1] : vector<8x128xf32> to vector<8xf32>
      %72 = vector.shape_cast %71 : vector<8xf32> to vector<8x1xf32>
      %73 = arith.addf %69, %72 : vector<8x1xf32>
      %c0_37 = arith.constant 0 : index
      %c0_38 = arith.constant 0 : index
      %c0_39 = arith.constant 0 : index
      %74 = vector.load %arg9[%c0_37, %c0_38, %c0_39] : memref<1x8x1xf32, #tpu.memory_space<vmem>>, vector<1x8x1xf32>
      %75 = vector.shape_cast %74 : vector<1x8x1xf32> to vector<8x1xf32>
      %76 = vector.shape_cast %73 : vector<8x1xf32> to vector<1x8x1xf32>
      tpu.vector_store %arg9[%c0_37, %c0_38, %c0_39], %76 {strides = array<i32>} : memref<1x8x1xf32, #tpu.memory_space<vmem>>, vector<1x8x1xf32>,
    } else {
    }
    %c0_i32_21 = arith.constant 0 : i32
    %54 = arith.cmpi eq, %arg2, %c0_i32_21 : i32
    %55 = arith.extui %54 : i1 to i32
    %c0_i32_22 = arith.constant 0 : i32
    %56 = arith.cmpi ne, %55, %c0_i32_22 : i32
    scf.if %56 {
      %60 = tpu.iota {dimensions = array<i32: 1>} : vector<1x128xi32>
      %c16_i32_26 = arith.constant 16 : i32
      %61 = vector.broadcast %c16_i32_26 : i32 to vector<1x128xi32>
      %62 = arith.cmpi slt, %60, %61 : vector<1x128xi32>
      %63 = arith.extui %62 : vector<1x128xi1> to vector<1x128xi32>
      %64 = arith.sitofp %63 : vector<1x128xi32> to vector<1x128xf32>
      %65 = vector.broadcast %64 : vector<1x128xf32> to vector<8x128xf32>
      %66 = arith.mulf %50, %65 : vector<8x128xf32>
      %c0_27 = arith.constant 0 : index
      %c0_28 = arith.constant 0 : index
      %c0_29 = arith.constant 0 : index
      %67 = vector.load %arg8[%c0_27, %c0_28, %c0_29] : memref<1x8x1xf32, #tpu.memory_space<vmem>>, vector<1x8x1xf32>
      %68 = vector.shape_cast %67 : vector<1x8x1xf32> to vector<8x1xf32>
      %cst_30 = arith.constant dense<0.000000e+00> : vector<8xf32>
      %69 = vector.multi_reduction <add>, %66, %cst_30 [1] : vector<8x128xf32> to vector<8xf32>
      %70 = vector.shape_cast %69 : vector<8xf32> to vector<8x1xf32>
      %71 = arith.addf %68, %70 : vector<8x1xf32>
      %c0_31 = arith.constant 0 : index
      %c0_32 = arith.constant 0 : index
      %c0_33 = arith.constant 0 : index
      %72 = vector.load %arg8[%c0_31, %c0_32, %c0_33] : memref<1x8x1xf32, #tpu.memory_space<vmem>>, vector<1x8x1xf32>
      %73 = vector.shape_cast %72 : vector<1x8x1xf32> to vector<8x1xf32>
      %74 = vector.shape_cast %71 : vector<8x1xf32> to vector<1x8x1xf32>
      tpu.vector_store %arg8[%c0_31, %c0_32, %c0_33], %74 {strides = array<i32>} : memref<1x8x1xf32, #tpu.memory_space<vmem>>, vector<1x8x1xf32>,
      %c0_34 = arith.constant 0 : index
      %c0_35 = arith.constant 0 : index
      %c0_36 = arith.constant 0 : index
      %75 = vector.load %arg9[%c0_34, %c0_35, %c0_36] : memref<1x8x1xf32, #tpu.memory_space<vmem>>, vector<1x8x1xf32>
      %76 = vector.shape_cast %75 : vector<1x8x1xf32> to vector<8x1xf32>
      %77 = arith.mulf %66, %50 : vector<8x128xf32>
      %cst_37 = arith.constant dense<0.000000e+00> : vector<8xf32>
      %78 = vector.multi_reduction <add>, %77, %cst_37 [1] : vector<8x128xf32> to vector<8xf32>
      %79 = vector.shape_cast %78 : vector<8xf32> to vector<8x1xf32>
      %80 = arith.addf %76, %79 : vector<8x1xf32>
      %c0_38 = arith.constant 0 : index
      %c0_39 = arith.constant 0 : index
      %c0_40 = arith.constant 0 : index
      %81 = vector.load %arg9[%c0_38, %c0_39, %c0_40] : memref<1x8x1xf32, #tpu.memory_space<vmem>>, vector<1x8x1xf32>
      %82 = vector.shape_cast %81 : vector<1x8x1xf32> to vector<8x1xf32>
      %83 = vector.shape_cast %80 : vector<8x1xf32> to vector<1x8x1xf32>
      tpu.vector_store %arg9[%c0_38, %c0_39, %c0_40], %83 {strides = array<i32>} : memref<1x8x1xf32, #tpu.memory_space<vmem>>, vector<1x8x1xf32>,
    } else {
    }
    %c0_23 = arith.constant 0 : index
    %c0_24 = arith.constant 0 : index
    %c0_25 = arith.constant 0 : index
    %57 = vector.load %arg7[%c0_23, %c0_24, %c0_25] : memref<1x8x128xf32, #tpu.memory_space<vmem>>, vector<1x8x128xf32>
    %58 = vector.shape_cast %57 : vector<1x8x128xf32> to vector<8x128xf32>
    %59 = vector.shape_cast %50 : vector<8x128xf32> to vector<1x8x128xf32>
    tpu.vector_store %arg7[%c0_23, %c0_24, %c0_25], %59 {strides = array<i32>} : memref<1x8x128xf32, #tpu.memory_space<vmem>>, vector<1x8x128xf32>,
    return
  }
  func.func @transform_0(%arg0: i32, %arg1: i32, %arg2: i32) -> (i32, i32) {
    %c0_i32 = arith.constant 0 : i32
    %c0_i32_0 = arith.constant 0 : i32
    return %arg1, %c0_i32 : i32, i32
  }
  func.func @transform_1(%arg0: i32, %arg1: i32, %arg2: i32) -> (i32, i32, i32) {
    %c1_i32 = arith.constant 1 : i32
    %0 = arith.muli %arg2, %c1_i32 : i32
    %c1_i32_0 = arith.constant 1 : i32
    %1 = arith.subi %0, %c1_i32_0 : i32
    %c0_i32 = arith.constant 0 : i32
    %2 = arith.maxsi %1, %c0_i32 : i32
    %c0_i32_1 = arith.constant 0 : i32
    %c0_i32_2 = arith.constant 0 : i32
    return %arg0, %c0_i32_1, %2 : i32, i32, i32
  }
  func.func @transform_2(%arg0: i32, %arg1: i32, %arg2: i32) -> (i32, i32, i32) {
    %c0_i32 = arith.constant 0 : i32
    %c0_i32_0 = arith.constant 0 : i32
    return %arg0, %c0_i32, %arg2 : i32, i32, i32
  }
  func.func @transform_3(%arg0: i32, %arg1: i32, %arg2: i32) -> (i32, i32, i32) {
    %c1_i32 = arith.constant 1 : i32
    %0 = arith.addi %arg2, %c1_i32 : i32
    %c1_i32_0 = arith.constant 1 : i32
    %1 = arith.muli %0, %c1_i32_0 : i32
    %c0_i32 = arith.constant 0 : i32
    %2 = arith.minsi %1, %c0_i32 : i32
    %c0_i32_1 = arith.constant 0 : i32
    %c0_i32_2 = arith.constant 0 : i32
    return %arg0, %c0_i32_1, %2 : i32, i32, i32
  }
  func.func @transform_4(%arg0: i32, %arg1: i32, %arg2: i32) -> (i32, i32, i32) {
    %c0_i32 = arith.constant 0 : i32
    return %arg0, %arg1, %arg2 : i32, i32, i32
  }
  func.func @transform_5(%arg0: i32, %arg1: i32, %arg2: i32) -> (i32, i32, i32) {
    %c0_i32 = arith.constant 0 : i32
    %c0_i32_0 = arith.constant 0 : i32
    return %arg0, %arg1, %c0_i32 : i32, i32, i32
  }
  func.func @transform_6(%arg0: i32, %arg1: i32, %arg2: i32) -> (i32, i32, i32) {
    %c0_i32 = arith.constant 0 : i32
    %c0_i32_0 = arith.constant 0 : i32
    return %arg0, %arg1, %c0_i32 : i32, i32, i32
  }
}

</mosaic_0001>

<bundles_post_ra>
// kernel: tpu_custom_call.1
= control target key start
LH: loop header
LB: loop body
LE: loop exit
PB: predicated region body
PF: predicated region fallthrough
CT: control target
= control target key end

     0   :  { %s1401_s0 = inlined_call_operand.hbm [shape: f32[8,12], index: 0, kind: input, shape index: {}]   ;;  %s1402_s1 = inlined_call_operand.hbm [shape: f32[2,4,16], index: 1, kind: input, shape index: {}]   ;;  %s1403_s2 = inlined_call_operand.hbm [shape: f32[2,4,16], index: 2, kind: input, shape index: {}]   ;;  %s1404_s3 = inlined_call_operand.hbm [shape: f32[2,4,16], index: 3, kind: input, shape index: {}]   ;;  %s1405_s4 = inlined_call_operand.hbm [shape: f32[2,8,128], index: 4, kind: output, shape index: {0}]   ;;  %s1406_s5 = inlined_call_operand.vmem [shape: f32[2,8,1], index: 5, kind: output, shape index: {1}]   ;;  %s1407_s6 = inlined_call_operand.vmem [shape: f32[2,8,1], index: 6, kind: output, shape index: {2}]  }
   0x1   :  { %1413 = sst [smem:[#allocation19_spill]] %s1401_s0 }
   0x2   :  { %1414 = sst [smem:[#allocation20_spill]] %s1402_s1 }
   0x3   :  { %1415 = sst [smem:[#allocation21_spill]] %s1403_s2 }
   0x4   :  { %12 = vsyncpa [#allocation3], 0 }
   0x5   :  { %13 = vsyncpa [#allocation6], 0 }
   0x6   :  { %15 = vsyncpa [#allocation6 + $0x1], 0 }
   0x7   :  { %16 = vsyncpa [#allocation9], 0 }
   0x8   :  { %18 = vsyncpa [#allocation9 + $0x1], 0 }
   0x9   :  { %19 = vsyncpa [#allocation4], 0 }
   0xa   :  { %21 = vsyncpa [#allocation4 + $0x1], 0  ;;  %s1185_s21 = smov 0   ;;  %s1187_s22 = smov 0  }
   0xb   :  { %s1189_s23 = smov 0   ;;  %s1191_s24 = smov 0  }
   0xc   :  { %s1193_s25 = smov 0   ;;  %s1195_s26 = smov 0  }
   0xd LB: > { %1416 = sst [smem:[#allocation15_spill]] %s1140_s25  ;;  %s46_s27 = sadd.s32 1, %s1140_s25  ;;  %s1144_s26 = sphi %s1195_s26, %s27_s26   ;;  %s1140_s25 = sphi %s1193_s25, %s1433_s25   ;;  %s1136_s24 = sphi %s1191_s24, %s1432_s24   ;;  %s1132_s23 = sphi %s1189_s23, %s1436_s23   ;;  %s1128_s22 = sphi %s1187_s22, %s1435_s22   ;;  %s1124_s21 = sphi %s1185_s21, %s1434_s21  }
   0xe   : > { %1417 = sst [smem:[#allocation16_spill]] %s1144_s26  ;;  %s87_s28 = sadd.s32 1, %s1132_s23 }
   0xf   : > { %p48_p0 = scmp.ge.s32.totalorder %s46_s27, 2  ;;  %p94_p1 = scmp.ne.s32.totalorder %s1132_s23, %s1128_s22 }
  0x10   : > { %p95_p2 = scmp.eq.s32.totalorder %s1144_s26, 0  ;;  %p821_p3 = scmp.ge.s32.totalorder %s1144_s26, 2 }
  0x11   : > { %s1438_s27 = smov (%p48_p0, %s46_s27), 0  ;;  %p874_p5 = scmp.lt.s32.totalorder %s1144_s26, 2 }
  0x12   : > { %1418 = sst [smem:[#allocation17_spill]] %s1438_s27  ;;  %p1226_p4 = por %p95_p2, %p94_p1 }
  0x13   : > { %s82_s30 = ssub.s32 %s1140_s25, %s1438_s27  ;;  %s286_s7 = sand.u32 1, %s1144_s26  }
  0x14   : > { %p85_p6 = scmp.eq.s32.totalorder %s82_s30, 0  ;;  %s1408_s8 = sand.u32 1, %s1132_s23  }
  0x15   : > { %s1236_s9 = sshll.u32 %s1140_s25, 2  ;;  %s1243_s11 = sshll.u32 %s1408_s8, 2 }
  0x16   : > { %s1239_s10 = scalar_select %p85_p6, %s1132_s23, %s87_s28  }
  0x17   : > { %s1421_s1 = sld [smem:[#allocation20_spill]]  ;;  %s290_s16 = scalar_lea.vmem [#allocation5], %s1243_s11 }
  0x18   : > { %1420 = sst [smem:[#allocation18_spill]] %s1239_s10  ;;  %s302_s17 = sshll.u32 %s290_s16, 4  ;;  %s303_s17 = int_to_ptr.vmem [resolvable:$true] %s302_s17 }
  0x19   : > { %p1254_p7 = pnand %p874_p5, %p1226_p4  ;;  %s1258_s19 = scalar_lea.sflag [#allocation6], %s286_s7 }
  0x1a   : > { %s1264_s20 = sadd.s32 4294967295, %s1144_s26   ;;  %s818_s28 = sadd.s32 4294967294, %s1144_s26  }
  0x1b   : > { %p100_p8 = scmp.ne.s32.totalorder %s1128_s22, %s1124_s21  ;;  %p101_p9 = scmp.eq.s32.totalorder %s1264_s20, 0 }
  0x1c   : > { %p190_p10 = scmp.eq.s32.totalorder %s1264_s20, 1  ;;  %p196_p11 = scmp.eq.s32.totalorder %s818_s28, 1 }
  0x1d   : > { %s298_s14 = scalar_lea.hbm %s1421_s1, %s1236_s9  ;;  %p819_p12 = scmp.ge.s32.totalorder %s1144_s26, 1 }
  0x1e   : > { %s300_s15 = sshll.u32 %s298_s14, 4  ;;  %p1274_p13 = por %p101_p9, %p100_p8  ;;  %s301_s15 = int_to_ptr.hbm [resolvable:$true] %s300_s15 }
  0x1f   : > { %862 = dma.hbm_to_vmem [thread:$0]  (!%p1254_p7), %s301_s15, 64, %s303_s17, %s1258_s19  }
  0x20   : > { %p1281_p0 = por %p190_p10, %p94_p1  ;;  %p1285_p2 = por %p196_p11, %p100_p8 }
  0x21   : > { %p259_p4 = scmp.lt.s32.totalorder %s1144_s26, 3  ;;  %s1426_s0 = sld [smem:[#allocation19_spill]] }
  0x22   : > { %s1146_s16 = smov [#allocation2]   ;;  %s1428_s2 = sld [smem:[#allocation21_spill]] }
  0x23   : > { %p1293_p5 = pnand %p819_p12, %p259_p4  ;;  %s275_s17 = sshll.u32 %s1146_s16, 4  ;;  %s276_s17 = int_to_ptr.vmem [resolvable:$true] %s275_s17 }
  0x24   : > { %s341_s16 = scalar_lea.hbm %s1404_s3, %s1236_s9  ;;  %s333_s10 = scalar_lea.vmem [#allocation8], %s1243_s11 }
  0x25   : > { %p855_p1 = pneg %p1293_p5  ;;  %s345_s26 = sshll.u32 %s333_s10, 4  ;;  %s346_s26 = int_to_ptr.vmem [resolvable:$true] %s345_s26 }
  0x26   : > { %s343_s8 = sshll.u32 %s341_s16, 4  ;;  %s1429_s28 = sand.u32 1, %s1132_s23   ;;  %s344_s8 = int_to_ptr.hbm [resolvable:$true] %s343_s8 }
  0x27   : > { %s273_s14 = sshll.u32 %s1426_s0, 4  ;;  %p856_p6 = pnand %p855_p1, %p101_p9  ;;  %s274_s14 = int_to_ptr.hbm [resolvable:$true] %s273_s14 }
  0x28   : > { %s318_s12 = scalar_lea.hbm %s1428_s2, %s1236_s9  ;;  %s313_s0 = scalar_lea.vmem [#allocation7], %s1243_s11 }
  0x29   : > { %s320_s13 = sshll.u32 %s318_s12, 4  ;;  %s322_s1 = sshll.u32 %s313_s0, 4  ;;  %s321_s13 = int_to_ptr.hbm [resolvable:$true] %s320_s13  ;;  %s323_s1 = int_to_ptr.vmem [resolvable:$true] %s322_s1 }
  0x2a   : > { %858 = dma.hbm_to_vmem [thread:$0]  (!%p856_p6), %s274_s14, 128, %s276_s17, [#allocation3]  }
  0x2b   : > { %865 = dma.hbm_to_vmem [thread:$0]  (!%p1254_p7), %s321_s13, 64, %s323_s1, %s1258_s19  }
  0x2c   : > { %s330_s2 = scalar_lea.sflag [#allocation9], %s1429_s28  ;;  %354 = sbr.rel (%p1293_p5) target bundleno = 439 (0x1b7), region = 36 }
  0x2d   : > { %868 = dma.hbm_to_vmem [thread:$0]  (!%p1254_p7), %s344_s8, 64, %s346_s26, %s330_s2  }
  0x31   : > { %1107 = dma.done.wait (%p101_p9), [#allocation3], 128  }
  0x32   : > { %1109 = vsyncadd (%p101_p9), [#allocation3], 4294967168  ;;  %s361_s0 = sand.u32 1, %s1264_s20  }
  0x33   : > { %s362_s1 = scalar_lea.sflag [#allocation6], %s361_s0 }
  0x34   : > { %1111 = dma.done.wait (%p1274_p13), %s362_s1, 128  }
  0x35   : > { %1113 = vsyncadd (%p1274_p13), %s362_s1, 4294967168  ;;  %s1330_s2 = sand.u32 1, %s1128_s22  }
  0x36   : > { %s831_s25 = sshll.u32 %s1330_s2, 2  ;;  %s382_s27 = scalar_lea.sflag [#allocation9], %s1330_s2 }
  0x37   : > { %s375_s26 = scalar_lea.vmem [#allocation7], %s831_s25 }
  0x38   : > { %1115 = dma.done.wait (%p1274_p13), %s382_s27, 64  }
  0x39   : > { %1117 = vsyncadd (%p1274_p13), %s382_s27, 4294967232  ;;  %v468_v0 = vlaneseq  ;;  %v466_v2 = vld [vmem:[%s375_s26] sm:$0xf]  ;;  %s1147_s9 = smov 127   ;;  %v1148_v4 = vmov 0.0   ;;  %s1149_s10 = smov 1  }
  0x3a   : > { %vm508_vm3 = vcmask 1043456   ;;  %v510_v15 = vld [vmem:[#allocation2] sm:$0xff]  ;;  %vm511_vm4 = vcmask 97280   ;;  %p445_p7 = scmp.lt.s32.totalorder %s1136_s24, 1  ;;  %vm463_vm5 = vcmask 7168   ;;  %s833_s12 = sshll.u32 %s1330_s2, 3 }
  0x3b   : > { %v469_v1 = vand.u32 127, %v468_v0  ;;  %s840_s13 = sshll.u32 %s1136_s24, 3  ;;  %s420_s0 = scalar_lea.vmem [#allocation10], %s833_s12 }
  0x3c   : > { %s446_s11 = scalar_select %p445_p7, %s1136_s24, 1 }
  0x3d   : > { %vm472_vm0 = vcmp.lt.s32.totalorder %v469_v1, 16  ;;  %vm497_vm1 = vcmp.lt.s32.totalorder %v469_v1, 1  ;;  %vm503_vm2 = vcmp.lt.s32.totalorder %v469_v1, 127  ;;  %s601_s28 = scalar_lea.hbm %s1405_s4, %s840_s13  ;;  %s603_s1 = sshll.u32 %s420_s0, 4  ;;  %s604_s1 = int_to_ptr.vmem [resolvable:$true] %s603_s1 }
  0x3e   : > { %v475_v3 = vsel %vm472_vm0, %v466_v2, 0.0  ;;  %s834_s18 = sshll.u32 %s446_s11, 3  ;;  %s605_s25 = sshll.u32 %s601_s28, 4  ;;  %v838_v16 = vsel %vm472_vm0, 1.0, %v1148_v4  ;;  %s606_s25 = int_to_ptr.hbm [resolvable:$true] %s605_s25 }
  0x3f   : > { %499 = vrot.lane.b32.xlu0 %v475_v3, %s1147_s9  ;;  %v929_v5 = vpack.i.bf16 %v475_v3, %v1148_v4  ;;  %v506_v10 = vrot.slane %v475_v3, 4  ;;  %s1344_s29 = scalar_lea.vmem %s1406_s5, %s834_s18  ;;  %s1351_s17 = scalar_lea.vmem %s1407_s6, %s834_s18 }
  0x40   : > { %464 = vst.msk [vmem:[%s1344_s29] sm:$0xff] %vm463_vm5, %v1148_v4  ;;  %s575_s26 = scalar_lea.sflag [#allocation4], %s1330_s2  ;;  %s1068_s27 = sshra.s32 %s606_s25, 4  ;;  %s1069_s27 = int_to_ptr.hbm [resolvable:$true] %s1068_s27 }
  0x41   : > { %930 = vrot.lane.b32.xlu1 %v929_v5, %s1149_s10  ;;  %465 = vst.msk [vmem:[%s1351_s17] sm:$0xff] %vm463_vm5, %v1148_v4  ;;  %s1074_s11 = scalar_lea.hbm %s1405_s4, 16  ;;  %p1075_p11 = scmp.lt.s32.totalorder %s1069_s27, %s1405_s4 }
  0x47   : > { %501 = vrot.lane.b32.xlu0 %v1148_v4, %s1147_s9  ;;  %s1070_s9 = scalar_lea.hbm %s1069_s27, 8 }
  0x48   : > { %p1071_p8 = scmp.ne.s32.totalorder %s1069_s27, %s1070_s9  ;;  %p1076_p12 = scmp.lt.s32.totalorder %s1074_s11, %s1070_s9 }
  0x4a   : > { %p1072_p9 = pnand %p1071_p8, %p1281_p0  ;;  %p1077_p13 = por %p1076_p12, %p1075_p11 }
  0x4c   : > { %p1073_p10 = pneg %p1072_p9 }
  0x4e   : > { %p1078_p4 = pnand %p1077_p13, %p1073_p10 }
  0xb1   : > { %v500_v6 = vpop.permute.xlu0 %499 }
  0xb3   : > { %v931_v7 = vpop.permute.xlu1 %930 }
  0xb4   : > { %v933_v8 = vunpack.i.h.bf16 %v931_v7  ;;  %v932_v9 = vunpack.i.l.bf16 %v931_v7 }
  0xb6   : > { %v498_v11 = vsel %vm497_vm1, %v932_v9, %v933_v8 }
  0xb7   : > { %v509_v14 = vsel %vm508_vm3, %v498_v11, %v506_v10 }
  0xb9   : > { %v502_v12 = vpop.permute.xlu0 %501 }
  0xba   : > { %v504_v13 = vsel %vm503_vm2, %v500_v6, %v502_v12 }
  0xbb   : > { %836 = vmatpush.msk.msra.mxu0 %vm508_vm3, %v504_v13 }
  0xbd   : > { %533 = vmatpush.msra.mxu0 %v509_v14 }
  0xbe   : > { %837 = vmatmul.msk.f32.vlgmr.msra.gmra.mxu0 %vm511_vm4, %v510_v15 }
 0x13b   : > { %v535_v17 = vpop.f32.mrf.mxu0 }
 0x13c   : > { %573 = vst [vmem:[%s420_s0] sm:$0xff] %v535_v17  ;;  %v560_v18 = vmul.f32 %v838_v16, %v535_v17 }
 0x13d   : > { %1081 = shalt.err (!%p1078_p4)
}
 0x13e   : > { %853 = dma.vmem_to_hbm [thread:$0]  (%p1281_p0), %s604_s1, 128, %s606_s25, %s575_s26   ;;  %562 = vadd.xlane.f32.xlu1 %v560_v18  ;;  %v568_v19 = vmul.f32 %v560_v18, %v535_v17  ;;  %v561_v20 = vld [vmem:[%s1344_s29] sm:$0xff] }
 0x13f   : > { %v567_v22 = vld [vmem:[%s1351_s17] sm:$0xff] }
 0x140   : > { %569 = vadd.xlane.f32.xlu2 %v568_v19 }
 0x1b1   : > { %v563_v21 = vpop.xlane.xlu1 %562 }
 0x1b2   : > { %v564_v23 = vadd.f32 %v563_v21, %v561_v20 }
 0x1b3   : > { %v570_v24 = vpop.xlane.xlu2 %569 }
 0x1b4   : > { %566 = vst.msk [vmem:[%s1344_s29] sm:$0xff] %vm463_vm5, %v564_v23  ;;  %v571_v25 = vadd.f32 %v570_v24, %v567_v22 }
 0x1b6   : > { %572 = vst.msk [vmem:[%s1351_s17] sm:$0xff] %vm463_vm5, %v571_v25 }
 0x1b7 PF: > { %s1430_s30 = sld [smem:[#allocation16_spill]]  ;;  %s623_s2 = sand.u32 1, %s1124_s21  }
 0x1b8   : > { %p870_p0 = pnand %p821_p3, %p1285_p2  ;;  %s624_s20 = scalar_lea.sflag [#allocation4], %s623_s2 }
 0x1ba   : > { %p871_p5 = pneg %p870_p0 }
 0x1bc   : > { %1119 = dma.done.wait (%p871_p5), %s624_s20, 128  }
 0x1bd   : > { %1121 = vsyncadd (%p871_p5), %s624_s20, 4294967168  ;;  %s27_s26 = sadd.s32 1, %s1430_s30   ;;  %s1431_s29 = sld [smem:[#allocation18_spill]] }
 0x1be   : > { %p24_p1 = scmp.ge.s32.totalorder %s27_s26, 4   ;;  %s1432_s24 = sld [smem:[#allocation15_spill]] }
 0x1bf   : > { %s1433_s25 = sld [smem:[#allocation17_spill]]  ;;  %s1434_s21 = smov %s1128_s22 }
 0x1c0   : > { %s1435_s22 = smov %s1132_s23  ;;  %26 = sbr.rel (!%p24_p1) target bundleno = 13 (0xd), region = 147 }
 0x1c3   : > { %s1436_s23 = smov %s1431_s29 }
 0x1c5   :  { %650 = vsyncpa [#allocation3], 1 }
 0x1c6   :  { %652 = vsyncpa [#allocation3 + $0x1], 1 }
 0x1c7   :  { %653 = vsyncpa [#allocation6], 1 }
 0x1c8   :  { %655 = vsyncpa [#allocation6 + $0x1], 1 }
 0x1c9   :  { %656 = vsyncpa [#allocation9], 1 }
 0x1ca   :  { %658 = vsyncpa [#allocation9 + $0x1], 1 }
 0x1cb   :  { %659 = vsyncpa [#allocation4], 1 }
 0x1cc   :  { %661 = vsyncpa [#allocation4 + $0x1], 1 }

</bundles_post_ra>
